<compile_context>
chip_gen: v7x
topology: tpu7x:2x2x1
jax: 0.10.0
libtpu: 0.0.40
codegen_flags: <defaults>
</compile_context>

<pallas_src>
import functools

import jax
import jax.numpy as jnp
from jax import lax
from jax.experimental import pallas as pl
from jax.experimental.pallas import tpu as pltpu


_ROW_TILE = 256  # rows per grid step when the M axis is tiled


# ---------------------------------------------------------------------------
# Kernels
# ---------------------------------------------------------------------------
def _matmul_bias_act_kernel(x_ref, w_ref, b_ref, o_ref, *, relu):
    """y = act(x @ w + b) on one row-tile (used for the conv layers)."""
    y = jnp.dot(x_ref[...], w_ref[...],
                preferred_element_type=jnp.float32) + b_ref[...]
    if relu:
        y = jnp.maximum(y, 0.0)
    o_ref[...] = y.astype(o_ref.dtype)


def _dqn_head_kernel(x_ref, wh_ref, bh_ref, wo_ref, bo_ref, o_ref, *,
                     linear, dueling):
    """Fused FC towers + dueling combine.

    dueling:  wh = [w_v1 || w_f1] (F, 2H), wo = blockdiag(w_v2, w_f2) (2H, 1+A)
              so ONE hidden matmul + ONE head matmul produce [v | adv].
    """
    h = jnp.dot(x_ref[...], wh_ref[...],
                preferred_element_type=jnp.float32) + bh_ref[...]
    if not linear:
        h = jnp.maximum(h, 0.0)
    q = jnp.dot(h, wo_ref[...], preferred_element_type=jnp.float32) + bo_ref[...]
    if dueling:
        v = q[:, 0:1]
        a = q[:, 1:]
        q = v + a - jnp.mean(a, axis=-1, keepdims=True)
    o_ref[...] = q.astype(o_ref.dtype)


# ---------------------------------------------------------------------------
# Pallas wrappers
# ---------------------------------------------------------------------------
def _matmul_bias_act(x, w, b, *, relu):
    """act(x @ w + b) via Pallas; whole-array VMEM for small M, row-tiled grid
    (resident weights, 'parallel' row axis) for large M."""
    M, K = x.shape
    N = w.shape[1]
    kernel = functools.partial(_matmul_bias_act_kernel, relu=relu)
    cost = pl.CostEstimate(flops=2 * M * K * N, transcendentals=0,
                           bytes_accessed=4 * (M * K + K * N + N + M * N))

    if M <= _ROW_TILE:
        # No grid: avoids degenerate grid=(1,) pipeline/double-buffer overhead.
        return pl.pallas_call(
            kernel,
            out_shape=jax.ShapeDtypeStruct((M, N), jnp.float32),
            in_specs=[pl.BlockSpec(memory_space=pltpu.MemorySpace.VMEM)] * 3,
            out_specs=pl.BlockSpec(memory_space=pltpu.MemorySpace.VMEM),
            cost_estimate=cost,
        )(x, w, b)

    # Row-tiled path: pad M with zero rows (inert), weights stay resident.
    pad = (-M) % _ROW_TILE
    if pad:
        x = jnp.pad(x, ((0, pad), (0, 0)))
    Mp = M + pad
    out = pl.pallas_call(
        kernel,
        out_shape=jax.ShapeDtypeStruct((Mp, N), jnp.float32),
        grid=(Mp // _ROW_TILE,),
        in_specs=[
            pl.BlockSpec((_ROW_TILE, K), lambda i: (i, 0)),
            pl.BlockSpec((K, N), lambda i: (0, 0)),   # weights resident
            pl.BlockSpec((1, N), lambda i: (0, 0)),
        ],
        out_specs=pl.BlockSpec((_ROW_TILE, N), lambda i: (i, 0)),
        compiler_params=pltpu.CompilerParams(
            dimension_semantics=("parallel",)),
        cost_estimate=cost,
    )(x, w, b)
    return out[:M] if pad else out


def _dqn_head(x, wh, bh, wo, bo, *, num_actions, linear, dueling):
    B, K = x.shape
    H = wh.shape[1]
    NO = wo.shape[1]
    kernel = functools.partial(_dqn_head_kernel, linear=linear, dueling=dueling)
    cost = pl.CostEstimate(flops=2 * B * (K * H + H * NO), transcendentals=0,
                           bytes_accessed=4 * (B * K + K * H + H + H * NO + NO
                                               + B * num_actions))

    if B <= _ROW_TILE:
        return pl.pallas_call(
            kernel,
            out_shape=jax.ShapeDtypeStruct((B, num_actions), jnp.float32),
            in_specs=[pl.BlockSpec(memory_space=pltpu.MemorySpace.VMEM)] * 5,
            out_specs=pl.BlockSpec(memory_space=pltpu.MemorySpace.VMEM),
            cost_estimate=cost,
        )(x, wh, bh, wo, bo)

    # Large-batch path (replay batches): tile the batch axis, weights resident,
    # batch axis 'parallel' so both v7x TensorCores are used.
    pad = (-B) % _ROW_TILE
    if pad:
        x = jnp.pad(x, ((0, pad), (0, 0)))
    Bp = B + pad
    out = pl.pallas_call(
        kernel,
        out_shape=jax.ShapeDtypeStruct((Bp, num_actions), jnp.float32),
        grid=(Bp // _ROW_TILE,),
        in_specs=[
            pl.BlockSpec((_ROW_TILE, K), lambda i: (i, 0)),
            pl.BlockSpec((K, H), lambda i: (0, 0)),
            pl.BlockSpec((1, H), lambda i: (0, 0)),
            pl.BlockSpec((H, NO), lambda i: (0, 0)),
            pl.BlockSpec((1, NO), lambda i: (0, 0)),
        ],
        out_specs=pl.BlockSpec((_ROW_TILE, num_actions), lambda i: (i, 0)),
        compiler_params=pltpu.CompilerParams(
            dimension_semantics=("parallel",),
            vmem_limit_bytes=48 * 1024 * 1024),  # within v7x 64 MiB physical
        cost_estimate=cost,
    )(x, wh, bh, wo, bo)
    return out[:B] if pad else out


# ---------------------------------------------------------------------------
# Conv layers as im2col (JAX data movement) + Pallas matmul
# ---------------------------------------------------------------------------
def _extract_patches(x, k, s):
    """x: (B, H, W, C) NHWC -> ((B*OH*OW, k*k*C), (B, OH, OW)).

    Feature ordering: index = (i*k + j)*C + c  (kernel row, kernel col, chan).
    Pure data movement; all compute happens in the Pallas matmul.
    """
    B, H, W, C = x.shape
    OH = (H - k) // s + 1
    OW = (W - k) // s + 1
    cols = []
    for i in range(k):
        for j in range(k):
            cols.append(x[:, i:i + s * OH:s, j:j + s * OW:s, :])
    patches = jnp.concatenate(cols, axis=-1)          # (B, OH, OW, k*k*C)
    return patches.reshape(B * OH * OW, k * k * C), (B, OH, OW)


def _conv_layer(x, w_mat, b, k, s, *, relu):
    patches, (B, OH, OW) = _extract_patches(x, k, s)
    y = _matmul_bias_act(patches, w_mat, b, relu=relu)
    return y.reshape(B, OH, OW, w_mat.shape[1])


# ---------------------------------------------------------------------------
# Full forward
# ---------------------------------------------------------------------------
def atari_dqn_forward(x_nchw, params, *, linear, dueling, num_actions):
    """Pallas implementation of AtariDQN.forward.  x_nchw: (B, 4, 84, 84)."""
    relu = not linear
    # NCHW (PyTorch) -> NHWC (channels on lanes).  Flatten after conv3 is in
    # NHWC order; fc weights in this script are created for that ordering
    # (equivalent to PyTorch up to a fixed permutation of fc input features).
    x = jnp.transpose(x_nchw, (0, 2, 3, 1)).astype(jnp.float32)
    x = _conv_layer(x, params["w_c1"], params["b_c1"], 8, 4, relu=relu)
    x = _conv_layer(x, params["w_c2"], params["b_c2"], 4, 2, relu=relu)
    x = _conv_layer(x, params["w_c3"], params["b_c3"], 3, 1, relu=relu)
    feat = x.reshape(x.shape[0], -1)                  # (B, 7*7*64)
    return _dqn_head(feat, params["wh"], params["bh"], params["wo"],
                     params["bo"], num_actions=num_actions, linear=linear,
                     dueling=dueling)


# ---------------------------------------------------------------------------
# Parameters (synthetic, nn.Linear/Conv2d-style uniform init) + fused heads
# ---------------------------------------------------------------------------
def init_params(key, num_actions, dueling):
    def uniform(k, shape, fan_in):
        bound = float(fan_in) ** -0.5
        return jax.random.uniform(k, shape, jnp.float32, -bound, bound)

    ks = iter(jax.random.split(key, 16))
    F, H = 7 * 7 * 64, 512
    p = {
        "w_c1": uniform(next(ks), (8 * 8 * 4, 32), 8 * 8 * 4),
        "b_c1": uniform(next(ks), (1, 32), 8 * 8 * 4),
        "w_c2": uniform(next(ks), (4 * 4 * 32, 64), 4 * 4 * 32),
        "b_c2": uniform(next(ks), (1, 64), 4 * 4 * 32),
        "w_c3": uniform(next(ks), (3 * 3 * 64, 64), 3 * 3 * 64),
        "b_c3": uniform(next(ks), (1, 64), 3 * 3 * 64),
        "w_f1": uniform(next(ks), (F, H), F),      # fc1 (stored (in, out))
        "b_f1": uniform(next(ks), (1, H), F),
        "w_f2": uniform(next(ks), (H, num_actions), H),   # fc2
        "b_f2": uniform(next(ks), (1, num_actions), H),
    }
    if dueling:
        p["w_v1"] = uniform(next(ks), (F, H), F)   # fc_v1
        p["b_v1"] = uniform(next(ks), (1, H), F)
        p["w_v2"] = uniform(next(ks), (H, 1), H)   # fc_v2
        p["b_v2"] = uniform(next(ks), (1, 1), H)
        # Fuse the two towers: one hidden matmul + one block-diag head matmul.
        p["wh"] = jnp.concatenate([p["w_v1"], p["w_f1"]], axis=1)   # (F, 2H)
        p["bh"] = jnp.concatenate([p["b_v1"], p["b_f1"]], axis=1)   # (1, 2H)
        wo = jnp.zeros((2 * H, 1 + num_actions), jnp.float32)
        wo = wo.at[:H, 0:1].set(p["w_v2"])
        wo = wo.at[H:, 1:].set(p["w_f2"])
        p["wo"] = wo                                                # (2H, 1+A)
        p["bo"] = jnp.concatenate([p["b_v2"], p["b_f2"]], axis=1)   # (1, 1+A)
    else:
        p["wh"], p["bh"] = p["w_f1"], p["b_f1"]
        p["wo"], p["bo"] = p["w_f2"], p["b_f2"]
    return p


# ---------------------------------------------------------------------------
# Pure-JAX reference (independent conv path; uses UNFUSED head weights)
# ---------------------------------------------------------------------------
def atari_dqn_ref(x_nchw, params, *, linear, dueling):
    act = (lambda v: v) if linear else (lambda v: jnp.maximum(v, 0.0))
    hp = lax.Precision.HIGHEST
    x = jnp.transpose(x_nchw, (0, 2, 3, 1)).astype(jnp.float32)

    def conv(x, w_mat, b, k, s):
        c_in, c_out = x.shape[-1], w_mat.shape[1]
        w = w_mat.reshape(k, k, c_in, c_out)
        y = lax.conv_general_dilated(
            x, w, (s, s), "VALID",
            dimension_numbers=("NHWC", "HWIO", "NHWC"), precision=hp)
        return act(y + b)

    x = conv(x, params["w_c1"], params["b_c1"], 8, 4)
    x = conv(x, params["w_c2"], params["b_c2"], 4, 2)
    x = conv(x, params["w_c3"], params["b_c3"], 3, 1)
    feat = x.reshape(x.shape[0], -1)
    adv = jnp.dot(act(jnp.dot(feat, params["w_f1"], precision=hp)
                      + params["b_f1"]), params["w_f2"], precision=hp) \
        + params["b_f2"]
    if not dueling:
        return adv
    v = jnp.dot(act(jnp.dot(feat, params["w_v1"], precision=hp)
                    + params["b_v1"]), params["w_v2"], precision=hp) \
        + params["b_v2"]
    return v + adv - jnp.mean(adv, axis=-1, keepdims=True)


# ---------------------------------------------------------------------------
if __name__ == "__main__":
    key = jax.random.PRNGKey(0)
    k_param, k_x = jax.random.split(key)

    B, NUM_ACTIONS = 2, 6
    x = jax.random.normal(k_x, (B, 4, 84, 84), jnp.float32)

    ok = True
    for dueling in (True, False):
        for linear in (False, True):
            params = init_params(k_param, NUM_ACTIONS, dueling)
            out = atari_dqn_forward(x, params, linear=linear, dueling=dueling,
                                    num_actions=NUM_ACTIONS)
            out = jax.block_until_ready(out)
            ref = atari_dqn_ref(x, params, linear=linear, dueling=dueling)
            if out.shape != (B, NUM_ACTIONS) or not jnp.allclose(
                    out, ref, atol=2e-3, rtol=2e-3):
                ok = False
                print("MISMATCH dueling=%s linear=%s max_err=%e" %
                      (dueling, linear, float(jnp.max(jnp.abs(out - ref)))))

    if ok:
        print("KERNEL_OK")
</pallas_src>

<mosaic_0001>
module attributes {stable_mosaic.version = 11 : i64} {
  func.func @_matmul_bias_act_kernel(%arg0: i32, %arg1: memref<256x256xf32, #tpu.memory_space<vmem>>, %arg2: memref<256x32xf32, #tpu.memory_space<vmem>>, %arg3: memref<1x32xf32, #tpu.memory_space<vmem>>, %arg4: memref<256x32xf32, #tpu.memory_space<vmem>>) attributes {dimension_semantics = [#tpu.dimension_semantics<parallel>], iteration_bounds = array<i64: 4>, scalar_prefetch = 0 : i64, scratch_operands = 0 : i64, tpu.core_type = #tpu.core_type<tc>, window_params = [{transform_indices = @transform_0, window_bounds = array<i64: 256, 256>}, {pipeline_mode = #tpu.pipeline_mode<synchronous>, transform_indices = @transform_1, window_bounds = array<i64: 256, 32>}, {pipeline_mode = #tpu.pipeline_mode<synchronous>, transform_indices = @transform_2, window_bounds = array<i64: 1, 32>}, {transform_indices = @transform_3, window_bounds = array<i64: 256, 32>}]} {
    %c0 = arith.constant 0 : index
    %c0_0 = arith.constant 0 : index
    %0 = vector.load %arg1[%c0, %c0_0] : memref<256x256xf32, #tpu.memory_space<vmem>>, vector<256x256xf32>
    %c0_1 = arith.constant 0 : index
    %c0_2 = arith.constant 0 : index
    %1 = vector.load %arg2[%c0_1, %c0_2] : memref<256x32xf32, #tpu.memory_space<vmem>>, vector<256x32xf32>
    %cst = arith.constant dense<0.000000e+00> : vector<256x32xf32>
    %2 = tpu.matmul %0, %1, %cst {dimension_numbers = #tpu.dot_dimension_numbers<[1], [0], [0], [1], [0, 0, 1, 1], [], []>} : vector<256x256xf32>, vector<256x32xf32>, vector<256x32xf32> -> vector<256x32xf32>
    %c0_3 = arith.constant 0 : index
    %c0_4 = arith.constant 0 : index
    %3 = vector.load %arg3[%c0_3, %c0_4] : memref<1x32xf32, #tpu.memory_space<vmem>>, vector<1x32xf32>
    %4 = vector.broadcast %3 : vector<1x32xf32> to vector<256x32xf32>
    %5 = arith.addf %2, %4 : vector<256x32xf32>
    %cst_5 = arith.constant 0.000000e+00 : f32
    %6 = vector.broadcast %cst_5 : f32 to vector<256x32xf32>
    %7 = arith.maximumf %5, %6 : vector<256x32xf32>
    %c0_6 = arith.constant 0 : index
    %c0_7 = arith.constant 0 : index
    %8 = vector.load %arg4[%c0_6, %c0_7] : memref<256x32xf32, #tpu.memory_space<vmem>>, vector<256x32xf32>
    tpu.vector_store %arg4[%c0_6, %c0_7], %7 {strides = array<i32>} : memref<256x32xf32, #tpu.memory_space<vmem>>, vector<256x32xf32>,
    return
  }
  func.func @transform_0(%arg0: i32) -> (i32, i32) {
    %c0_i32 = arith.constant 0 : i32
    %c0_i32_0 = arith.constant 0 : i32
    return %arg0, %c0_i32 : i32, i32
  }
  func.func @transform_1(%arg0: i32) -> (i32, i32) {
    %c0_i32 = arith.constant 0 : i32
    %c0_i32_0 = arith.constant 0 : i32
    %c0_i32_1 = arith.constant 0 : i32
    return %c0_i32, %c0_i32_0 : i32, i32
  }
  func.func @transform_2(%arg0: i32) -> (i32, i32) {
    %c0_i32 = arith.constant 0 : i32
    %c0_i32_0 = arith.constant 0 : i32
    %c0_i32_1 = arith.constant 0 : i32
    return %c0_i32, %c0_i32_0 : i32, i32
  }
  func.func @transform_3(%arg0: i32) -> (i32, i32) {
    %c0_i32 = arith.constant 0 : i32
    %c0_i32_0 = arith.constant 0 : i32
    return %arg0, %c0_i32 : i32, i32
  }
}

</mosaic_0001>

<bundles_post_ra>
// kernel: tpu_custom_call.1
= control target key start
LH: loop header
LB: loop body
LE: loop exit
PB: predicated region body
PF: predicated region fallthrough
CT: control target
= control target key end

     0   :  { %8 = vsyncpa [#allocation3], 0  ;;  %s1287_s0 = inlined_call_operand.hbm [shape: f32[1024,256], index: 0, kind: input, shape index: {}]   ;;  %s1288_s1 = inlined_call_operand.vmem [shape: f32[256,32], index: 1, kind: input, shape index: {}]   ;;  %s1289_s2 = inlined_call_operand.vmem [shape: f32[1,32], index: 2, kind: input, shape index: {}]   ;;  %s1290_s3 = inlined_call_operand.vmem [shape: f32[1024,32], index: 3, kind: output, shape index: {}]  }
   0x1   :  { %10 = vsyncpa [#allocation3 + $0x1], 0  ;;  %s883_s12 = smov 0   ;;  %s885_s13 = smov 0  }
   0x2   :  { %s887_s14 = smov 0   ;;  %s889_s15 = smov 0  }
   0x3 LB: > { %s654_s16 = sadd.s32 4294967295, %s857_s15   ;;  %s903_s17 = sadd.s32 1, %s857_s15   ;;  %s857_s15 = sphi %s889_s15, %s1297_s15   ;;  %s853_s14 = sphi %s887_s14, %s1296_s14   ;;  %s849_s13 = sphi %s885_s13, %s1295_s13   ;;  %s845_s12 = sphi %s883_s12, %s1294_s12  }
   0x4   : > { %s20_s18 = ssub.s32 %s857_s15, %s903_s17  ;;  %s23_s19 = sadd.s32 1, %s853_s14 }
   0x5   : > { %p21_p0 = scmp.eq.s32.totalorder %s20_s18, 0  ;;  %p30_p1 = scmp.ne.s32.totalorder %s853_s14, %s849_s13 }
   0x6   : > { %p31_p2 = scmp.eq.s32.totalorder %s857_s15, 0  ;;  %p36_p3 = scmp.ne.s32.totalorder %s849_s13, %s845_s12 }
   0x7   : > { %s913_s20 = scalar_select %p21_p0, %s853_s14, %s23_s19  }
   0x8   : > { %p32_p4 = por %p31_p2, %p30_p1  ;;  %p37_p5 = scmp.eq.s32.totalorder %s654_s16, 0 }
   0x9   : > { %p757_p6 = scmp.lt.s32.totalorder %s857_s15, 4  ;;  %s134_s22 = sand.u32 1, %s853_s14  }
   0xa   : > { %p918_p7 = por %p37_p5, %p36_p3  ;;  %s658_s23 = sshll.u32 %s134_s22, 9 }
   0xb   : > { %s670_s24 = sshll.u32 %s857_s15, 13  ;;  %s138_s28 = scalar_lea.vmem [#allocation2], %s658_s23 }
   0xc   : > { %s927_s27 = scalar_lea.hbm %s1287_s0, %s670_s24  ;;  %s146_s29 = sshll.u32 %s138_s28, 4  ;;  %s929_s29 = int_to_ptr.vmem [resolvable:$true] %s146_s29 }
   0xd   : > { %p931_p8 = pnand %p757_p6, %p32_p4  ;;  %s936_s4 = scalar_lea.sflag [#allocation3], %s134_s22 }
   0xe   : > { %s793_s5 = scalar_lea.hbm %s927_s27, 8192  ;;  %s798_s8 = scalar_lea.hbm %s1287_s0, 32768 }
   0xf   : > { %p794_p10 = scmp.ne.s32.totalorder %s927_s27, %s793_s5  ;;  %p795_p11 = pneg %p931_p8 }
  0x10   : > { %p799_p0 = scmp.lt.u32.totalorder %s927_s27, %s1287_s0  ;;  %p800_p1 = scmp.lt.u32.totalorder %s798_s8, %s793_s5 }
  0x11   : > { %p796_p12 = pnand %p795_p11, %p794_p10  ;;  %p802_p3 = scmp.lt.u32.totalorder %s793_s5, %s927_s27 }
  0x12   : > { %p801_p2 = por %p800_p1, %p799_p0 }
  0x13   : > { %p797_p13 = pneg %p796_p12 }
  0x14   : > { %p803_p4 = por %p802_p3, %p801_p2 }
  0x16   : > { %p804_p5 = pnand %p803_p4, %p797_p13 }
  0x18   : > { %807 = shalt.err (!%p804_p5)
}
  0x19   : > { %s808_s11 = scalar_lea.vmem %s929_s29, 8192  ;;  %s859_s12 = smov [#allocation2]  }
  0x1a   : > { %p809_p6 = scmp.ne.s32.totalorder %s929_s29, %s808_s11  ;;  %s813_s18 = sshll.u32 %s859_s12, 4  ;;  %s814_s18 = int_to_ptr.vmem [resolvable:$false] %s813_s18 }
  0x1b   : > { %s815_s19 = scalar_lea.vmem %s814_s18, 16384  ;;  %p816_p9 = scmp.lt.s32.totalorder %s929_s29, %s814_s18 }
  0x1c   : > { %p811_p10 = pnand %p809_p6, %p795_p11  ;;  %p817_p0 = scmp.lt.s32.totalorder %s815_s19, %s808_s11 }
  0x1e   : > { %p812_p12 = pneg %p811_p10  ;;  %p818_p1 = por %p817_p0, %p816_p9 }
  0x20   : > { %p819_p2 = pnand %p818_p1, %p812_p12 }
  0x22   : > { %822 = shalt.err (!%p819_p2)
}
  0x23   : > { %s860_s22 = smov 256   ;;  %s861_s23 = smov 16  }
  0x24   : > { %756 = dma.hbm_to_vmem [thread:$0]  (!%p931_p8), %s927_s27, 8192, %s929_s29, %s936_s4, %s860_s22, %s860_s22, %s861_s23  }
  0x25   : > { %p154_p11 = scmp.lt.s32.totalorder %s857_s15, 5  ;;  %p1293_p13 = scmp.ge.s32.totalorder %s857_s15, 1 }
  0x27   : > { %p155_p3 = pnand %p1293_p13, %p154_p11 }
  0x28   : > { %s160_s24 = sand.u32 (!%p155_p3), 1, %s849_s13  }
  0x29   : > { %158 = sbr.rel (%p155_p3) target bundleno = 392 (0x188), region = 32  ;;  %s663_s25 = sshll.u32 (!%p155_p3), %s160_s24, 9 }
  0x2a   : > { %s161_s26 = scalar_lea.sflag (!%p155_p3), [#allocation3], %s160_s24  ;;  %s968_s28 = scalar_lea.vmem (!%p155_p3), [#allocation2], %s663_s25 }
  0x30   : > { %840 = dma.done.wait (%p918_p7), %s161_s26, 8192  }
  0x31   : > { %842 = vsyncadd (%p918_p7), %s161_s26, 4294959104  ;;  %v862_v0 = vmov 0.0|0.0   ;;  %v258_v1 = vld [vmem:[%s1288_s1] sm:$0xff]  ;;  %v259_v2 = vld [vmem:[%s1288_s1 + $0x8] sm:$0xff]  ;;  %s664_s5 = sshll.u32 %s654_s16, 5  ;;  %vm554_vm0 = vcmask 261120  }
  0x32   : > { %671 = vmatprep.subr.bf16.mxu0 %v862_v0  ;;  %719 = vmatprep.subr.bf16.mxu1 %v862_v0  ;;  %v260_v3 = vld [vmem:[%s1288_s1 + $0x10] sm:$0xff]  ;;  %v672_v4 = vpack.c.bf16 %v259_v2, %v258_v1  ;;  %v261_v5 = vld [vmem:[%s1288_s1 + $0x18] sm:$0xff]  ;;  %v262_v7 = vld [vmem:[%s1288_s1 + $0x20] sm:$0xff]  ;;  %p189_p7 = scmp.lt.s32.totalorder %s664_s5, 127 }
  0x33   : > { %v675_v6 = vpack.c.bf16 %v261_v5, %v260_v3  ;;  %v263_v8 = vld [vmem:[%s1288_s1 + $0x28] sm:$0xff]  ;;  %v264_v10 = vld [vmem:[%s1288_s1 + $0x30] sm:$0xff]  ;;  %v265_v11 = vld [vmem:[%s1288_s1 + $0x38] sm:$0xff] }
  0x34   : > { %673 = vmatpush1.bf16.msra.mxu0 %v672_v4  ;;  %735 = vmatpush1.bf16.msra.mxu1 %v672_v4  ;;  %v678_v9 = vpack.c.bf16 %v263_v8, %v262_v7  ;;  %v195_v12 = vld [vmem:[%s968_s28 + $0x8] sm:$0xff]  ;;  %v681_v13 = vpack.c.bf16 %v265_v11, %v264_v10  ;;  %v266_v15 = vld [vmem:[%s1288_s1 + $0x40] sm:$0xff]  ;;  %v268_v18 = vld [vmem:[%s1288_s1 + $0x50] sm:$0xff]  ;;  %s1299_s5 = smov (!%p189_p7, %s664_s5), 127 }
  0x35   : > { %674 = vmatprep.subr.bf16.mxu0 %v862_v0  ;;  %720 = vmatprep.subr.bf16.mxu1 %v862_v0  ;;  %v227_v14 = vld [vmem:[%s968_s28 + $0x108] sm:$0xff]  ;;  %v269_v19 = vld [vmem:[%s1288_s1 + $0x58] sm:$0xff]  ;;  %v270_v21 = vld [vmem:[%s1288_s1 + $0x60] sm:$0xff]  ;;  %s665_s7 = sshll.u32 %s1299_s5, 3 }
  0x36   : > { %v267_v16 = vld [vmem:[%s1288_s1 + $0x48] sm:$0xff]  ;;  %361 = vmatprep.mubr.f32.mxu0 %v195_v12  ;;  %441 = vmatprep.mubr.f32.mxu1 %v227_v14  ;;  %v687_v20 = vpack.c.bf16 %v269_v19, %v268_v18  ;;  %v272_v24 = vld [vmem:[%s1288_s1 + $0x70] sm:$0xff]  ;;  %v273_v25 = vld [vmem:[%s1288_s1 + $0x78] sm:$0xff]  ;;  %s1178_s15 = scalar_lea.vmem %s1290_s3, %s665_s7 }
  0x37   : > { %v684_v17 = vpack.c.bf16 %v267_v16, %v266_v15  ;;  %v271_v22 = vld [vmem:[%s1288_s1 + $0x68] sm:$0xff]  ;;  %v693_v26 = vpack.c.bf16 %v273_v25, %v272_v24  ;;  %v274_v27 = vld [vmem:[%s1288_s1 + $0x80] sm:$0xff]  ;;  %v276_v30 = vld [vmem:[%s1288_s1 + $0x90] sm:$0xff] }
  0x38   : > { %676 = vmatpush1.bf16.msra.mxu0 %v675_v6  ;;  %736 = vmatpush1.bf16.msra.mxu1 %v675_v6  ;;  %v690_v23 = vpack.c.bf16 %v271_v22, %v270_v21  ;;  %v275_v28 = vld [vmem:[%s1288_s1 + $0x88] sm:$0xff]  ;;  %v277_v31 = vld [vmem:[%s1288_s1 + $0x98] sm:$0xff]  ;;  %v278_v33 = vld [vmem:[%s1288_s1 + $0xa0] sm:$0xff] }
  0x39   : > { %677 = vmatprep.subr.bf16.mxu0 %v862_v0  ;;  %721 = vmatprep.subr.bf16.mxu1 %v862_v0  ;;  %v696_v29 = vpack.c.bf16 %v275_v28, %v274_v27  ;;  %v699_v32 = vpack.c.bf16 %v277_v31, %v276_v30  ;;  %v279_v34 = vld [vmem:[%s1288_s1 + $0xa8] sm:$0xff]  ;;  %v280_v36 = vld [vmem:[%s1288_s1 + $0xb0] sm:$0xff]  ;;  %v281_v37 = vld [vmem:[%s1288_s1 + $0xb8] sm:$0xff] }
  0x3a   : > { %v702_v35 = vpack.c.bf16 %v279_v34, %v278_v33  ;;  %v705_v38 = vpack.c.bf16 %v281_v37, %v280_v36  ;;  %v282_v39 = vld [vmem:[%s1288_s1 + $0xc0] sm:$0xff]  ;;  %v283_v40 = vld [vmem:[%s1288_s1 + $0xc8] sm:$0xff]  ;;  %v284_v42 = vld [vmem:[%s1288_s1 + $0xd0] sm:$0xff] }
  0x3b   : > { %v708_v41 = vpack.c.bf16 %v283_v40, %v282_v39  ;;  %v285_v43 = vld [vmem:[%s1288_s1 + $0xd8] sm:$0xff]  ;;  %v286_v45 = vld [vmem:[%s1288_s1 + $0xe0] sm:$0xff]  ;;  %v287_v46 = vld [vmem:[%s1288_s1 + $0xe8] sm:$0xff] }
  0x3c   : > { %679 = vmatpush1.bf16.msra.mxu0 %v678_v9  ;;  %737 = vmatpush1.bf16.msra.mxu1 %v678_v9  ;;  %v711_v44 = vpack.c.bf16 %v285_v43, %v284_v42  ;;  %v714_v47 = vpack.c.bf16 %v287_v46, %v286_v45  ;;  %v288_v48 = vld [vmem:[%s1288_s1 + $0xf0] sm:$0xff]  ;;  %v289_v49 = vld [vmem:[%s1288_s1 + $0xf8] sm:$0xff]  ;;  %v194_v51 = vld [vmem:[%s968_s28] sm:$0xff] }
  0x3d   : > { %680 = vmatprep.subr.bf16.mxu0 %v862_v0  ;;  %722 = vmatprep.subr.bf16.mxu1 %v862_v0  ;;  %v717_v50 = vpack.c.bf16 %v289_v49, %v288_v48  ;;  %v226_v52 = vld [vmem:[%s968_s28 + $0x100] sm:$0xff]  ;;  %v197_v53 = vld [vmem:[%s968_s28 + $0x18] sm:$0xff]  ;;  %v196_v55 = vld [vmem:[%s968_s28 + $0x10] sm:$0xff] }
  0x3e   : > { %v229_v54 = vld [vmem:[%s968_s28 + $0x118] sm:$0xff]  ;;  %v228_v56 = vld [vmem:[%s968_s28 + $0x110] sm:$0xff]  ;;  %v199_v57 = vld [vmem:[%s968_s28 + $0x28] sm:$0xff] }
  0x3f   : > { %v231_v58 = vld [vmem:[%s968_s28 + $0x128] sm:$0xff]  ;;  %v198_v59 = vld [vmem:[%s968_s28 + $0x20] sm:$0xff]  ;;  %v201_v61 = vld [vmem:[%s968_s28 + $0x38] sm:$0xff] }
  0x40   : > { %682 = vmatpush1.bf16.msra.mxu0 %v681_v13  ;;  %738 = vmatpush1.bf16.msra.mxu1 %v681_v13  ;;  %v230_v60 = vld [vmem:[%s968_s28 + $0x120] sm:$0xff]  ;;  %v233_v62 = vld [vmem:[%s968_s28 + $0x138] sm:$0xff]  ;;  %v200_v63 = vld [vmem:[%s968_s28 + $0x30] sm:$0xff] }
  0x41   : > { %683 = vmatprep.subr.bf16.mxu0 %v862_v0  ;;  %723 = vmatprep.subr.bf16.mxu1 %v862_v0  ;;  %v203_v1 = vld [vmem:[%s968_s28 + $0x48] sm:$0xff]  ;;  %v202_v3 = vld [vmem:[%s968_s28 + $0x40] sm:$0xff]  ;;  %v205_v5 = vld [vmem:[%s968_s28 + $0x58] sm:$0xff] }
  0x42   : > { %v235_v2 = vld [vmem:[%s968_s28 + $0x148] sm:$0xff]  ;;  %v234_v4 = vld [vmem:[%s968_s28 + $0x140] sm:$0xff]  ;;  %v237_v6 = vld [vmem:[%s968_s28 + $0x158] sm:$0xff] }
  0x43   : > { %v204_v7 = vld [vmem:[%s968_s28 + $0x50] sm:$0xff]  ;;  %v207_v9 = vld [vmem:[%s968_s28 + $0x68] sm:$0xff]  ;;  %v206_v11 = vld [vmem:[%s968_s28 + $0x60] sm:$0xff] }
  0x44   : > { %685 = vmatpush1.bf16.msra.mxu0 %v684_v17  ;;  %739 = vmatpush1.bf16.msra.mxu1 %v684_v17  ;;  %v236_v8 = vld [vmem:[%s968_s28 + $0x150] sm:$0xff]  ;;  %v239_v10 = vld [vmem:[%s968_s28 + $0x168] sm:$0xff]  ;;  %v238_v12 = vld [vmem:[%s968_s28 + $0x160] sm:$0xff] }
  0x45   : > { %686 = vmatprep.subr.bf16.mxu0 %v862_v0  ;;  %724 = vmatprep.subr.bf16.mxu1 %v862_v0  ;;  %v209_v13 = vld [vmem:[%s968_s28 + $0x78] sm:$0xff]  ;;  %v208_v15 = vld [vmem:[%s968_s28 + $0x70] sm:$0xff]  ;;  %v211_v17 = vld [vmem:[%s968_s28 + $0x88] sm:$0xff] }
  0x46   : > { %v241_v14 = vld [vmem:[%s968_s28 + $0x178] sm:$0xff]  ;;  %v240_v16 = vld [vmem:[%s968_s28 + $0x170] sm:$0xff]  ;;  %v243_v18 = vld [vmem:[%s968_s28 + $0x188] sm:$0xff] }
  0x47   : > { %v210_v19 = vld [vmem:[%s968_s28 + $0x80] sm:$0xff]  ;;  %v213_v21 = vld [vmem:[%s968_s28 + $0x98] sm:$0xff]  ;;  %v244_v24 = vld [vmem:[%s968_s28 + $0x190] sm:$0xff] }
  0x48   : > { %688 = vmatpush1.bf16.msra.mxu0 %v687_v20  ;;  %740 = vmatpush1.bf16.msra.mxu1 %v687_v20  ;;  %v242_v20 = vld [vmem:[%s968_s28 + $0x180] sm:$0xff]  ;;  %v245_v22 = vld [vmem:[%s968_s28 + $0x198] sm:$0xff]  ;;  %v215_v25 = vld [vmem:[%s968_s28 + $0xa8] sm:$0xff] }
  0x49   : > { %689 = vmatprep.subr.bf16.mxu0 %v862_v0  ;;  %725 = vmatprep.subr.bf16.mxu1 %v862_v0  ;;  %v214_v27 = vld [vmem:[%s968_s28 + $0xa0] sm:$0xff]  ;;  %v249_v30 = vld [vmem:[%s968_s28 + $0x1b8] sm:$0xff]  ;;  %v216_v31 = vld [vmem:[%s968_s28 + $0xb0] sm:$0xff] }
  0x4a   : > { %v246_v28 = vld [vmem:[%s968_s28 + $0x1a0] sm:$0xff]  ;;  %v219_v33 = vld [vmem:[%s968_s28 + $0xc8] sm:$0xff]  ;;  %v221_v37 = vld [vmem:[%s968_s28 + $0xd8] sm:$0xff] }
  0x4b   : > { %v251_v34 = vld [vmem:[%s968_s28 + $0x1c8] sm:$0xff]  ;;  %v250_v36 = vld [vmem:[%s968_s28 + $0x1c0] sm:$0xff]  ;;  %v220_v39 = vld [vmem:[%s968_s28 + $0xd0] sm:$0xff] }
  0x4c   : > { %691 = vmatpush1.bf16.msra.mxu0 %v690_v23  ;;  %741 = vmatpush1.bf16.msra.mxu1 %v690_v23  ;;  %v212_v23 = vld [vmem:[%s968_s28 + $0x90] sm:$0xff]  ;;  %v255_v42 = vld [vmem:[%s968_s28 + $0x1e8] sm:$0xff]  ;;  %v222_v43 = vld [vmem:[%s968_s28 + $0xe0] sm:$0xff] }
  0x4d   : > { %692 = vmatprep.subr.bf16.mxu0 %v862_v0  ;;  %726 = vmatprep.subr.bf16.mxu1 %v862_v0  ;;  %v252_v40 = vld [vmem:[%s968_s28 + $0x1d0] sm:$0xff]  ;;  %v225_v45 = vld [vmem:[%s968_s28 + $0xf8] sm:$0xff]  ;;  %v1171_v49 = vld [vmem:[%s1289_s2] ss:$0 sm:$0xff] }
  0x4e   : > { %v257_v46 = vld [vmem:[%s968_s28 + $0x1f8] sm:$0xff]  ;;  %v256_v48 = vld [vmem:[%s968_s28 + $0x1f0] sm:$0xff] }
  0x50   : > { %694 = vmatpush1.bf16.msra.mxu0 %v693_v26  ;;  %742 = vmatpush1.bf16.msra.mxu1 %v693_v26  ;;  %v247_v26 = vld [vmem:[%s968_s28 + $0x1a8] sm:$0xff] }
  0x51   : > { %695 = vmatprep.subr.bf16.mxu0 %v862_v0  ;;  %727 = vmatprep.subr.bf16.mxu1 %v862_v0 }
  0x54   : > { %697 = vmatpush1.bf16.msra.mxu0 %v696_v29  ;;  %743 = vmatpush1.bf16.msra.mxu1 %v696_v29  ;;  %v217_v29 = vld [vmem:[%s968_s28 + $0xb8] sm:$0xff] }
  0x55   : > { %698 = vmatprep.subr.bf16.mxu0 %v862_v0  ;;  %728 = vmatprep.subr.bf16.mxu1 %v862_v0 }
  0x58   : > { %700 = vmatpush1.bf16.msra.mxu0 %v699_v32  ;;  %744 = vmatpush1.bf16.msra.mxu1 %v699_v32  ;;  %v248_v32 = vld [vmem:[%s968_s28 + $0x1b0] sm:$0xff] }
  0x59   : > { %701 = vmatprep.subr.bf16.mxu0 %v862_v0  ;;  %729 = vmatprep.subr.bf16.mxu1 %v862_v0 }
  0x5c   : > { %703 = vmatpush1.bf16.msra.mxu0 %v702_v35  ;;  %745 = vmatpush1.bf16.msra.mxu1 %v702_v35  ;;  %v218_v35 = vld [vmem:[%s968_s28 + $0xc0] sm:$0xff] }
  0x5d   : > { %704 = vmatprep.subr.bf16.mxu0 %v862_v0  ;;  %730 = vmatprep.subr.bf16.mxu1 %v862_v0 }
  0x60   : > { %706 = vmatpush1.bf16.msra.mxu0 %v705_v38  ;;  %746 = vmatpush1.bf16.msra.mxu1 %v705_v38  ;;  %v253_v38 = vld [vmem:[%s968_s28 + $0x1d8] sm:$0xff] }
  0x61   : > { %707 = vmatprep.subr.bf16.mxu0 %v862_v0  ;;  %731 = vmatprep.subr.bf16.mxu1 %v862_v0 }
  0x64   : > { %709 = vmatpush1.bf16.msra.mxu0 %v708_v41  ;;  %747 = vmatpush1.bf16.msra.mxu1 %v708_v41  ;;  %v223_v41 = vld [vmem:[%s968_s28 + $0xe8] sm:$0xff] }
  0x65   : > { %710 = vmatprep.subr.bf16.mxu0 %v862_v0  ;;  %732 = vmatprep.subr.bf16.mxu1 %v862_v0 }
  0x68   : > { %712 = vmatpush1.bf16.msra.mxu0 %v711_v44  ;;  %748 = vmatpush1.bf16.msra.mxu1 %v711_v44  ;;  %v254_v44 = vld [vmem:[%s968_s28 + $0x1e0] sm:$0xff] }
  0x69   : > { %713 = vmatprep.subr.bf16.mxu0 %v862_v0  ;;  %733 = vmatprep.subr.bf16.mxu1 %v862_v0 }
  0x6c   : > { %715 = vmatpush1.bf16.msra.mxu0 %v714_v47  ;;  %749 = vmatpush1.bf16.msra.mxu1 %v714_v47  ;;  %v224_v47 = vld [vmem:[%s968_s28 + $0xf0] sm:$0xff] }
  0x6d   : > { %716 = vmatprep.subr.bf16.mxu0 %v862_v0  ;;  %734 = vmatprep.subr.bf16.mxu1 %v862_v0  ;;  %v232_v0 = vld [vmem:[%s968_s28 + $0x130] sm:$0xff] }
  0x70   : > { %718 = vmatpush1.bf16.msra.mxu0 %v717_v50  ;;  %750 = vmatpush1.bf16.msra.mxu1 %v717_v50 }
  0x73   : > { %362 = vmatmul.mubr.f32.vlgmr.msra.gmra.mrb[0].mxu0 %v194_v51  ;;  %442 = vmatmul.mubr.f32.vlgmr.msra.gmra.mrb[0].mxu1 %v226_v52 }
  0x74   : > { %366 = vmatprep.mubr.f32.mxu0 %v197_v53  ;;  %446 = vmatprep.mubr.f32.mxu1 %v229_v54 }
  0x77   : > { %367 = vmatmul.mubr.f32.gmra.mrb[2].mxu0 %v196_v55  ;;  %447 = vmatmul.mubr.f32.gmra.mrb[2].mxu1 %v228_v56 }
  0x78   : > { %371 = vmatprep.mubr.f32.mxu0 %v199_v57  ;;  %451 = vmatprep.mubr.f32.mxu1 %v231_v58 }
  0x7b   : > { %372 = vmatmul.mubr.f32.gmra.mrb[4].mxu0 %v198_v59  ;;  %452 = vmatmul.mubr.f32.gmra.mrb[4].mxu1 %v230_v60 }
  0x7c   : > { %376 = vmatprep.mubr.f32.mxu0 %v201_v61  ;;  %456 = vmatprep.mubr.f32.mxu1 %v233_v62 }
  0x7f   : > { %377 = vmatmul.mubr.f32.gmra.mrb[6].mxu0 %v200_v63  ;;  %457 = vmatmul.mubr.f32.gmra.mrb[6].mxu1 %v232_v0 }
  0x80   : > { %381 = vmatprep.mubr.f32.mxu0 %v203_v1  ;;  %461 = vmatprep.mubr.f32.mxu1 %v235_v2 }
  0x83   : > { %382 = vmatmul.mubr.f32.gmra.mrb[8].mxu0 %v202_v3  ;;  %462 = vmatmul.mubr.f32.gmra.mrb[8].mxu1 %v234_v4 }
  0x84   : > { %386 = vmatprep.mubr.f32.mxu0 %v205_v5  ;;  %466 = vmatprep.mubr.f32.mxu1 %v237_v6 }
  0x87   : > { %387 = vmatmul.mubr.f32.gmra.mrb[10].mxu0 %v204_v7  ;;  %467 = vmatmul.mubr.f32.gmra.mrb[10].mxu1 %v236_v8 }
  0x88   : > { %391 = vmatprep.mubr.f32.mxu0 %v207_v9  ;;  %471 = vmatprep.mubr.f32.mxu1 %v239_v10 }
  0x8b   : > { %392 = vmatmul.mubr.f32.gmra.mrb[12].mxu0 %v206_v11  ;;  %472 = vmatmul.mubr.f32.gmra.mrb[12].mxu1 %v238_v12 }
  0x8c   : > { %396 = vmatprep.mubr.f32.mxu0 %v209_v13  ;;  %476 = vmatprep.mubr.f32.mxu1 %v241_v14 }
  0x8f   : > { %397 = vmatmul.mubr.f32.gmra.mrb[14].mxu0 %v208_v15  ;;  %477 = vmatmul.mubr.f32.gmra.mrb[14].mxu1 %v240_v16 }
  0x90   : > { %401 = vmatprep.mubr.f32.mxu0 %v211_v17  ;;  %481 = vmatprep.mubr.f32.mxu1 %v243_v18 }
  0x93   : > { %402 = vmatmul.mubr.f32.gmra.mrb[16].mxu0 %v210_v19  ;;  %482 = vmatmul.mubr.f32.gmra.mrb[16].mxu1 %v242_v20 }
  0x94   : > { %406 = vmatprep.mubr.f32.mxu0 %v213_v21  ;;  %486 = vmatprep.mubr.f32.mxu1 %v245_v22 }
  0x97   : > { %407 = vmatmul.mubr.f32.gmra.mrb[18].mxu0 %v212_v23  ;;  %487 = vmatmul.mubr.f32.gmra.mrb[18].mxu1 %v244_v24 }
  0x98   : > { %411 = vmatprep.mubr.f32.mxu0 %v215_v25  ;;  %491 = vmatprep.mubr.f32.mxu1 %v247_v26 }
  0x9b   : > { %412 = vmatmul.mubr.f32.gmra.mrb[20].mxu0 %v214_v27  ;;  %492 = vmatmul.mubr.f32.gmra.mrb[20].mxu1 %v246_v28 }
  0x9c   : > { %416 = vmatprep.mubr.f32.mxu0 %v217_v29  ;;  %496 = vmatprep.mubr.f32.mxu1 %v249_v30 }
  0x9f   : > { %417 = vmatmul.mubr.f32.gmra.mrb[22].mxu0 %v216_v31  ;;  %497 = vmatmul.mubr.f32.gmra.mrb[22].mxu1 %v248_v32 }
  0xa0   : > { %421 = vmatprep.mubr.f32.mxu0 %v219_v33  ;;  %501 = vmatprep.mubr.f32.mxu1 %v251_v34 }
  0xa3   : > { %422 = vmatmul.mubr.f32.gmra.mrb[24].mxu0 %v218_v35  ;;  %502 = vmatmul.mubr.f32.gmra.mrb[24].mxu1 %v250_v36 }
  0xa4   : > { %426 = vmatprep.mubr.f32.mxu0 %v221_v37  ;;  %506 = vmatprep.mubr.f32.mxu1 %v253_v38 }
  0xa7   : > { %427 = vmatmul.mubr.f32.gmra.mrb[26].mxu0 %v220_v39  ;;  %507 = vmatmul.mubr.f32.gmra.mrb[26].mxu1 %v252_v40 }
  0xa8   : > { %431 = vmatprep.mubr.f32.mxu0 %v223_v41  ;;  %511 = vmatprep.mubr.f32.mxu1 %v255_v42 }
  0xab   : > { %432 = vmatmul.mubr.f32.gmra.mrb[28].mxu0 %v222_v43  ;;  %512 = vmatmul.mubr.f32.gmra.mrb[28].mxu1 %v254_v44 }
  0xac   : > { %436 = vmatprep.mubr.f32.mxu0 %v225_v45  ;;  %516 = vmatprep.mubr.f32.mxu1 %v257_v46 }
  0xaf   : > { %437 = vmatmul.mubr.f32.gmra.mrb[30].mxu0 %v224_v47  ;;  %517 = vmatmul.mubr.f32.gmra.mrb[30].mxu1 %v256_v48 }
 0x146   : > { %v363_v50 = vpop.f32.mrb[0].mxu0  ;;  %v443_v51 = vpop.f32.mrb[0].mxu1 }
 0x147   : > { %v364_v52 = vadd.f32 %v1171_v49, %v363_v50  ;;  %v444_v53 = vadd.f32 %v1171_v49, %v443_v51  ;;  %v365_v54 = vpop.f32.mrb[1].mxu0  ;;  %v445_v55 = vpop.f32.mrb[1].mxu1 }
 0x149   : > { %v522_v56 = vmax.f32 %v364_v52, 0.0  ;;  %v538_v57 = vmax.f32 %v444_v53, 0.0 }
 0x14a   : > { %v368_v58 = vpop.f32.mrb[2].mxu0  ;;  %v448_v59 = vpop.f32.mrb[2].mxu1 }
 0x14b   : > { %555 = vst.msk [vmem:[%s1178_s15] sm:$0xff] %vm554_vm0, %v522_v56  ;;  %571 = vst.msk [vmem:[%s1178_s15 + $0x80] sm:$0xff] %vm554_vm0, %v538_v57  ;;  %v369_v60 = vadd.f32 %v1171_v49, %v368_v58  ;;  %v449_v61 = vadd.f32 %v1171_v49, %v448_v59  ;;  %v370_v62 = vpop.f32.mrb[3].mxu0  ;;  %v450_v63 = vpop.f32.mrb[3].mxu1 }
 0x14d   : > { %v523_v0 = vmax.f32 %v369_v60, 0.0  ;;  %v539_v1 = vmax.f32 %v449_v61, 0.0 }
 0x14e   : > { %v373_v2 = vpop.f32.mrb[4].mxu0  ;;  %v453_v3 = vpop.f32.mrb[4].mxu1 }
 0x14f   : > { %556 = vst.msk [vmem:[%s1178_s15 + $0x8] sm:$0xff] %vm554_vm0, %v523_v0  ;;  %572 = vst.msk [vmem:[%s1178_s15 + $0x88] sm:$0xff] %vm554_vm0, %v539_v1  ;;  %v374_v4 = vadd.f32 %v1171_v49, %v373_v2  ;;  %v454_v5 = vadd.f32 %v1171_v49, %v453_v3  ;;  %v375_v6 = vpop.f32.mrb[5].mxu0  ;;  %v455_v7 = vpop.f32.mrb[5].mxu1 }
 0x151   : > { %v524_v8 = vmax.f32 %v374_v4, 0.0  ;;  %v540_v9 = vmax.f32 %v454_v5, 0.0 }
 0x152   : > { %v378_v10 = vpop.f32.mrb[6].mxu0  ;;  %v458_v11 = vpop.f32.mrb[6].mxu1 }
 0x153   : > { %557 = vst.msk [vmem:[%s1178_s15 + $0x10] sm:$0xff] %vm554_vm0, %v524_v8  ;;  %573 = vst.msk [vmem:[%s1178_s15 + $0x90] sm:$0xff] %vm554_vm0, %v540_v9  ;;  %v379_v12 = vadd.f32 %v1171_v49, %v378_v10  ;;  %v459_v13 = vadd.f32 %v1171_v49, %v458_v11  ;;  %v380_v14 = vpop.f32.mrb[7].mxu0  ;;  %v460_v15 = vpop.f32.mrb[7].mxu1 }
 0x155   : > { %v525_v16 = vmax.f32 %v379_v12, 0.0  ;;  %v541_v17 = vmax.f32 %v459_v13, 0.0 }
 0x156   : > { %v383_v18 = vpop.f32.mrb[8].mxu0  ;;  %v463_v19 = vpop.f32.mrb[8].mxu1 }
 0x157   : > { %558 = vst.msk [vmem:[%s1178_s15 + $0x18] sm:$0xff] %vm554_vm0, %v525_v16  ;;  %574 = vst.msk [vmem:[%s1178_s15 + $0x98] sm:$0xff] %vm554_vm0, %v541_v17  ;;  %v384_v20 = vadd.f32 %v1171_v49, %v383_v18  ;;  %v464_v21 = vadd.f32 %v1171_v49, %v463_v19  ;;  %v385_v22 = vpop.f32.mrb[9].mxu0  ;;  %v465_v23 = vpop.f32.mrb[9].mxu1 }
 0x159   : > { %v526_v24 = vmax.f32 %v384_v20, 0.0  ;;  %v542_v25 = vmax.f32 %v464_v21, 0.0 }
 0x15a   : > { %v388_v26 = vpop.f32.mrb[10].mxu0  ;;  %v468_v27 = vpop.f32.mrb[10].mxu1 }
 0x15b   : > { %559 = vst.msk [vmem:[%s1178_s15 + $0x20] sm:$0xff] %vm554_vm0, %v526_v24  ;;  %575 = vst.msk [vmem:[%s1178_s15 + $0xa0] sm:$0xff] %vm554_vm0, %v542_v25  ;;  %v389_v28 = vadd.f32 %v1171_v49, %v388_v26  ;;  %v469_v29 = vadd.f32 %v1171_v49, %v468_v27  ;;  %v390_v30 = vpop.f32.mrb[11].mxu0  ;;  %v470_v31 = vpop.f32.mrb[11].mxu1 }
 0x15d   : > { %v527_v32 = vmax.f32 %v389_v28, 0.0  ;;  %v543_v33 = vmax.f32 %v469_v29, 0.0 }
 0x15e   : > { %v393_v34 = vpop.f32.mrb[12].mxu0  ;;  %v473_v35 = vpop.f32.mrb[12].mxu1 }
 0x15f   : > { %560 = vst.msk [vmem:[%s1178_s15 + $0x28] sm:$0xff] %vm554_vm0, %v527_v32  ;;  %576 = vst.msk [vmem:[%s1178_s15 + $0xa8] sm:$0xff] %vm554_vm0, %v543_v33  ;;  %v394_v36 = vadd.f32 %v1171_v49, %v393_v34  ;;  %v474_v37 = vadd.f32 %v1171_v49, %v473_v35  ;;  %v395_v38 = vpop.f32.mrb[13].mxu0  ;;  %v475_v39 = vpop.f32.mrb[13].mxu1 }
 0x161   : > { %v528_v40 = vmax.f32 %v394_v36, 0.0  ;;  %v544_v41 = vmax.f32 %v474_v37, 0.0 }
 0x162   : > { %v398_v42 = vpop.f32.mrb[14].mxu0  ;;  %v478_v43 = vpop.f32.mrb[14].mxu1 }
 0x163   : > { %561 = vst.msk [vmem:[%s1178_s15 + $0x30] sm:$0xff] %vm554_vm0, %v528_v40  ;;  %577 = vst.msk [vmem:[%s1178_s15 + $0xb0] sm:$0xff] %vm554_vm0, %v544_v41  ;;  %v399_v44 = vadd.f32 %v1171_v49, %v398_v42  ;;  %v479_v45 = vadd.f32 %v1171_v49, %v478_v43  ;;  %v400_v46 = vpop.f32.mrb[15].mxu0  ;;  %v480_v47 = vpop.f32.mrb[15].mxu1 }
 0x165   : > { %v529_v48 = vmax.f32 %v399_v44, 0.0  ;;  %v545_v50 = vmax.f32 %v479_v45, 0.0 }
 0x166   : > { %v403_v51 = vpop.f32.mrb[16].mxu0  ;;  %v483_v52 = vpop.f32.mrb[16].mxu1 }
 0x167   : > { %562 = vst.msk [vmem:[%s1178_s15 + $0x38] sm:$0xff] %vm554_vm0, %v529_v48  ;;  %578 = vst.msk [vmem:[%s1178_s15 + $0xb8] sm:$0xff] %vm554_vm0, %v545_v50  ;;  %v404_v53 = vadd.f32 %v1171_v49, %v403_v51  ;;  %v484_v54 = vadd.f32 %v1171_v49, %v483_v52  ;;  %v405_v55 = vpop.f32.mrb[17].mxu0  ;;  %v485_v56 = vpop.f32.mrb[17].mxu1 }
 0x169   : > { %v530_v57 = vmax.f32 %v404_v53, 0.0  ;;  %v546_v58 = vmax.f32 %v484_v54, 0.0 }
 0x16a   : > { %v408_v59 = vpop.f32.mrb[18].mxu0  ;;  %v488_v60 = vpop.f32.mrb[18].mxu1 }
 0x16b   : > { %563 = vst.msk [vmem:[%s1178_s15 + $0x40] sm:$0xff] %vm554_vm0, %v530_v57  ;;  %579 = vst.msk [vmem:[%s1178_s15 + $0xc0] sm:$0xff] %vm554_vm0, %v546_v58  ;;  %v409_v61 = vadd.f32 %v1171_v49, %v408_v59  ;;  %v489_v62 = vadd.f32 %v1171_v49, %v488_v60  ;;  %v410_v63 = vpop.f32.mrb[19].mxu0  ;;  %v490_v0 = vpop.f32.mrb[19].mxu1 }
 0x16d   : > { %v531_v1 = vmax.f32 %v409_v61, 0.0  ;;  %v547_v2 = vmax.f32 %v489_v62, 0.0 }
 0x16e   : > { %v413_v3 = vpop.f32.mrb[20].mxu0  ;;  %v493_v4 = vpop.f32.mrb[20].mxu1 }
 0x16f   : > { %564 = vst.msk [vmem:[%s1178_s15 + $0x48] sm:$0xff] %vm554_vm0, %v531_v1  ;;  %580 = vst.msk [vmem:[%s1178_s15 + $0xc8] sm:$0xff] %vm554_vm0, %v547_v2  ;;  %v414_v5 = vadd.f32 %v1171_v49, %v413_v3  ;;  %v494_v6 = vadd.f32 %v1171_v49, %v493_v4  ;;  %v415_v7 = vpop.f32.mrb[21].mxu0  ;;  %v495_v8 = vpop.f32.mrb[21].mxu1 }
 0x171   : > { %v532_v9 = vmax.f32 %v414_v5, 0.0  ;;  %v548_v10 = vmax.f32 %v494_v6, 0.0 }
 0x172   : > { %v418_v11 = vpop.f32.mrb[22].mxu0  ;;  %v498_v12 = vpop.f32.mrb[22].mxu1 }
 0x173   : > { %565 = vst.msk [vmem:[%s1178_s15 + $0x50] sm:$0xff] %vm554_vm0, %v532_v9  ;;  %581 = vst.msk [vmem:[%s1178_s15 + $0xd0] sm:$0xff] %vm554_vm0, %v548_v10  ;;  %v419_v13 = vadd.f32 %v1171_v49, %v418_v11  ;;  %v499_v14 = vadd.f32 %v1171_v49, %v498_v12  ;;  %v420_v15 = vpop.f32.mrb[23].mxu0  ;;  %v500_v16 = vpop.f32.mrb[23].mxu1 }
 0x175   : > { %v533_v17 = vmax.f32 %v419_v13, 0.0  ;;  %v549_v18 = vmax.f32 %v499_v14, 0.0 }
 0x176   : > { %v423_v19 = vpop.f32.mrb[24].mxu0  ;;  %v503_v20 = vpop.f32.mrb[24].mxu1 }
 0x177   : > { %566 = vst.msk [vmem:[%s1178_s15 + $0x58] sm:$0xff] %vm554_vm0, %v533_v17  ;;  %582 = vst.msk [vmem:[%s1178_s15 + $0xd8] sm:$0xff] %vm554_vm0, %v549_v18  ;;  %v424_v21 = vadd.f32 %v1171_v49, %v423_v19  ;;  %v504_v22 = vadd.f32 %v1171_v49, %v503_v20  ;;  %v425_v23 = vpop.f32.mrb[25].mxu0  ;;  %v505_v24 = vpop.f32.mrb[25].mxu1 }
 0x179   : > { %v534_v25 = vmax.f32 %v424_v21, 0.0  ;;  %v550_v26 = vmax.f32 %v504_v22, 0.0 }
 0x17a   : > { %v428_v27 = vpop.f32.mrb[26].mxu0  ;;  %v508_v28 = vpop.f32.mrb[26].mxu1 }
 0x17b   : > { %567 = vst.msk [vmem:[%s1178_s15 + $0x60] sm:$0xff] %vm554_vm0, %v534_v25  ;;  %583 = vst.msk [vmem:[%s1178_s15 + $0xe0] sm:$0xff] %vm554_vm0, %v550_v26  ;;  %v429_v29 = vadd.f32 %v1171_v49, %v428_v27  ;;  %v509_v30 = vadd.f32 %v1171_v49, %v508_v28  ;;  %v430_v31 = vpop.f32.mrb[27].mxu0  ;;  %v510_v32 = vpop.f32.mrb[27].mxu1 }
 0x17d   : > { %v535_v33 = vmax.f32 %v429_v29, 0.0  ;;  %v551_v34 = vmax.f32 %v509_v30, 0.0 }
 0x17e   : > { %v433_v35 = vpop.f32.mrb[28].mxu0  ;;  %v513_v36 = vpop.f32.mrb[28].mxu1 }
 0x17f   : > { %568 = vst.msk [vmem:[%s1178_s15 + $0x68] sm:$0xff] %vm554_vm0, %v535_v33  ;;  %584 = vst.msk [vmem:[%s1178_s15 + $0xe8] sm:$0xff] %vm554_vm0, %v551_v34  ;;  %v434_v37 = vadd.f32 %v1171_v49, %v433_v35  ;;  %v514_v38 = vadd.f32 %v1171_v49, %v513_v36  ;;  %v435_v39 = vpop.f32.mrb[29].mxu0  ;;  %v515_v40 = vpop.f32.mrb[29].mxu1 }
 0x181   : > { %v536_v41 = vmax.f32 %v434_v37, 0.0  ;;  %v552_v42 = vmax.f32 %v514_v38, 0.0 }
 0x182   : > { %v438_v43 = vpop.f32.mrb[30].mxu0  ;;  %v518_v44 = vpop.f32.mrb[30].mxu1 }
 0x183   : > { %569 = vst.msk [vmem:[%s1178_s15 + $0x70] sm:$0xff] %vm554_vm0, %v536_v41  ;;  %585 = vst.msk [vmem:[%s1178_s15 + $0xf0] sm:$0xff] %vm554_vm0, %v552_v42  ;;  %v439_v45 = vadd.f32 %v1171_v49, %v438_v43  ;;  %v519_v46 = vadd.f32 %v1171_v49, %v518_v44  ;;  %v440_v47 = vpop.f32.mrb[31].mxu0  ;;  %v520_v48 = vpop.f32.mrb[31].mxu1 }
 0x185   : > { %v537_v50 = vmax.f32 %v439_v45, 0.0  ;;  %v553_v51 = vmax.f32 %v519_v46, 0.0 }
 0x187   : > { %570 = vst.msk [vmem:[%s1178_s15 + $0x78] sm:$0xff] %vm554_vm0, %v537_v50  ;;  %586 = vst.msk [vmem:[%s1178_s15 + $0xf8] sm:$0xff] %vm554_vm0, %v553_v51 }
 0x188 PF: > { %p13_p8 = scmp.ge.s32.totalorder %s903_s17, 6   ;;  %s1294_s12 = smov %s849_s13 }
 0x189   : > { %s1295_s13 = smov %s853_s14  ;;  %s1296_s14 = smov %s913_s20 }
 0x18a   : > { %s1297_s15 = smov %s903_s17  ;;  %15 = sbr.rel (!%p13_p8) target bundleno = 3 (0x3), region = 72 }
 0x191   :  { %609 = vsyncpa [#allocation3], 1 }
 0x192   :  { %611 = vsyncpa [#allocation3 + $0x1], 1 }

</bundles_post_ra>
